<compile_context>
chip_gen: v7x
topology: tpu7x:2x2x1
jax: 0.10.0
libtpu: 0.0.40
codegen_flags: <defaults>
</compile_context>

<pallas_src>
import functools

import jax
import jax.numpy as jnp
from jax.experimental import pallas as pl
from jax.experimental.pallas import tpu as pltpu


def _round_up(x, m):
    return (x + m - 1) // m * m


def _scatter_mean_kernel(head_ref, scale_ref, neigh_ref, out_ref):
    """Accumulate (1/deg[head])-weighted neighbor rows into the output block.

    head_ref : (1, 1, e_tile) int32    global head entity id per edge (-1 = pad)
    scale_ref: (1, 1, e_tile) float32  1/deg[head] per edge (0 = pad)
    neigh_ref: (e_tile, D_pad) bfloat16  entity_emb[tail] * weight[edge_type]
    out_ref  : (ent_block, D_pad) float32  resident accumulator == final mean
    """
    edge_step = pl.program_id(1)

    @pl.when(edge_step == 0)
    def _init():
        out_ref[...] = jnp.zeros_like(out_ref)

    ent_block = out_ref.shape[0]
    e_tile = neigh_ref.shape[0]

    head = head_ref[...].reshape((1, e_tile))     # int32
    scale = scale_ref[...].reshape((1, e_tile))   # float32

    row0 = pl.program_id(0) * ent_block
    rows = jax.lax.broadcasted_iota(jnp.int32, (ent_block, e_tile), 0) + row0

    # Degree-weighted one-hot scatter matrix.  Compare/select in f32 (v5e VPU
    # has no bf16), cast to bf16 only at the MXU input; 0 is exact in bf16 and
    # the matmul accumulates in f32.
    scatter = jnp.where(rows == head, scale, 0.0).astype(jnp.bfloat16)

    out_ref[...] += jnp.dot(scatter, neigh_ref[...],
                            preferred_element_type=jnp.float32)


@functools.partial(jax.jit, static_argnames=("e_tile", "ent_block"))
def aggregator_forward(entity_emb, edge_index, edge_type, weight, *,
                       e_tile=256, ent_block=None):
    """scatter_mean(entity_emb[tail] * weight[edge_type], head, dim_size=n_entities).

    entity_emb: (n_entities, D); edge_index: (2, n_edges) int; edge_type: (n_edges,)
    int; weight: (n_relations, D).  Returns (n_entities, D) float32.
    """
    n_entities, d = entity_emb.shape
    head = edge_index[0].astype(jnp.int32)
    tail = edge_index[1].astype(jnp.int32)
    etype = edge_type.astype(jnp.int32)
    n_edges = head.shape[0]

    if n_edges == 0:   # scatter_mean over an empty edge set -> all zeros
        return jnp.zeros((n_entities, d), jnp.float32)

    d_pad = _round_up(d, 128)
    if ent_block is None:
        ent_blk = n_entities          # single resident output block
        n_ent_pad = n_entities
    else:
        ent_blk = min(_round_up(ent_block, 8), _round_up(n_entities, 8))
        n_ent_pad = _round_up(n_entities, ent_blk)
    n_ent_blocks = n_ent_pad // ent_blk

    emb = entity_emb.astype(jnp.float32)
    rel = weight.astype(jnp.float32)

    # Degree / per-edge inverse degree (O(E)) and neighbor gather (O(E*D)):
    # cheap, data-independent of the scatter, done once in plain XLA.
    deg = jax.ops.segment_sum(jnp.ones((n_edges,), jnp.float32), head,
                              num_segments=n_entities)
    edge_scale = (1.0 / jnp.maximum(deg, 1.0))[head]              # (E,) f32
    neigh = (emb[tail] * rel[etype]).astype(jnp.bfloat16)         # (E, D) bf16

    # Pad edges to a multiple of e_tile (pad: head=-1, scale=0 -> contributes 0)
    # and pad D to a lane-dense multiple of 128 (unmasked stores).
    e_pad = (-n_edges) % e_tile
    head_p = jnp.pad(head, (0, e_pad), constant_values=-1)
    scale_p = jnp.pad(edge_scale, (0, e_pad))
    neigh_p = jnp.pad(neigh, ((0, e_pad), (0, d_pad - d)))
    n_steps = (n_edges + e_pad) // e_tile

    head_b = head_p.reshape(n_steps, 1, e_tile)
    scale_b = scale_p.reshape(n_steps, 1, e_tile)

    out = pl.pallas_call(
        _scatter_mean_kernel,
        out_shape=jax.ShapeDtypeStruct((n_ent_pad, d_pad), jnp.float32),
        grid_spec=pltpu.PrefetchScalarGridSpec(
            num_scalar_prefetch=0,
            grid=(n_ent_blocks, n_steps),
            in_specs=[
                pl.BlockSpec((1, 1, e_tile), lambda i, e: (e, 0, 0)),   # head ids
                pl.BlockSpec((1, 1, e_tile), lambda i, e: (e, 0, 0)),   # 1/deg
                pl.BlockSpec((e_tile, d_pad), lambda i, e: (e, 0)),     # neigh bf16
            ],
            out_specs=pl.BlockSpec((ent_blk, d_pad), lambda i, e: (i, 0)),
        ),
        compiler_params=pltpu.CompilerParams(
            dimension_semantics=("parallel", "arbitrary"),
            vmem_limit_bytes=64 * 1024 * 1024),
    )(head_b, scale_b, neigh_p)

    return out[:n_entities, :d]


def graph_conv_forward(entity_emb, edge_index, edge_type, weight, params, *,
                       agg_type="mixed", e_tile=256, ent_block=None):
    """GraphConv.forward in eval mode (node_dropout=False, mess_dropout=False).

    params: list of (W1, b1, W2, b2) per hop with torch.nn.Linear convention
            (y = x @ W.T + b), W1: (C, C), W2: (C, 2C).
    Returns (entity_res_emb, relation_res_emb).
    """
    # TODO(synk): node/message dropout are stochastic train-time ops (torch RNG);
    # this deterministic forward runs them as identity (eval mode).  The dense
    # hop-update (normalize + Linear + LeakyReLU + residual mix) is standard
    # dense algebra left to XLA; Pallas is used for the irregular scatter_mean.
    res = entity_emb.astype(jnp.float32)
    for (w1, b1, w2, b2) in params:
        agg = aggregator_forward(res, edge_index, edge_type, weight,
                                 e_tile=e_tile, ent_block=ent_block)
        ent = agg / jnp.maximum(
            jnp.linalg.norm(agg, axis=1, keepdims=True), 1e-12)   # F.normalize
        r1 = jax.nn.leaky_relu((res + ent) @ w1.T + b1, negative_slope=0.01)
        r2 = jax.nn.leaky_relu(
            jnp.concatenate([res, ent], axis=1) @ w2.T + b2, negative_slope=0.01)
        if agg_type == "add":
            res = r1
        elif agg_type == "concat":
            res = r2
        elif agg_type == "mixed":
            res = r1 + r2
        else:
            raise NotImplementedError(agg_type)
    return res, weight


# ----------------------------- references ----------------------------------
def _aggregator_ref_f32(entity_emb, edge_index, edge_type, weight):
    head, tail = edge_index[0], edge_index[1]
    n = entity_emb.shape[0]
    neigh = entity_emb[tail] * weight[edge_type]
    s = jax.ops.segment_sum(neigh, head, num_segments=n)
    c = jax.ops.segment_sum(jnp.ones((head.shape[0],), jnp.float32), head,
                            num_segments=n)
    return s / jnp.maximum(c, 1.0)[:, None]


def _aggregator_ref_bf16(entity_emb, edge_index, edge_type, weight):
    # Mirrors the kernel's rounding: bf16 MXU operands, exact f32 products/acc.
    head, tail = edge_index[0], edge_index[1]
    n = entity_emb.shape[0]
    neigh = (entity_emb[tail] * weight[edge_type]).astype(jnp.bfloat16)
    c = jax.ops.segment_sum(jnp.ones((head.shape[0],), jnp.float32), head,
                            num_segments=n)
    scale = (1.0 / jnp.maximum(c, 1.0))[head].astype(jnp.bfloat16)
    contrib = neigh.astype(jnp.float32) * scale.astype(jnp.float32)[:, None]
    return jax.ops.segment_sum(contrib, head, num_segments=n)


def _graph_conv_ref(entity_emb, edge_index, edge_type, weight, params, agg_fn,
                    agg_type="mixed"):
    res = entity_emb.astype(jnp.float32)
    for (w1, b1, w2, b2) in params:
        agg = agg_fn(res, edge_index, edge_type, weight)
        ent = agg / jnp.maximum(jnp.linalg.norm(agg, axis=1, keepdims=True), 1e-12)
        r1 = jax.nn.leaky_relu((res + ent) @ w1.T + b1, negative_slope=0.01)
        r2 = jax.nn.leaky_relu(
            jnp.concatenate([res, ent], axis=1) @ w2.T + b2, negative_slope=0.01)
        res = {"add": r1, "concat": r2, "mixed": r1 + r2}[agg_type]
    return res, weight


if __name__ == "__main__":
    key = jax.random.PRNGKey(0)
    n_users = 32          # GraphConv(n_users): unused by the forward math
    n_entities = 128
    n_relations = 8
    channel = 32
    n_edges = 300         # deliberately not a multiple of the edge tile
    n_hops = 2

    ks = jax.random.split(key, 12)
    entity_emb = jax.random.normal(ks[0], (n_entities, channel), jnp.float32)
    weight = jax.random.normal(ks[1], (n_relations, channel), jnp.float32) * 0.4
    head = jax.random.randint(ks[2], (n_edges,), 0, n_entities, dtype=jnp.int32)
    tail = jax.random.randint(ks[3], (n_edges,), 0, n_entities, dtype=jnp.int32)
    edge_type = jax.random.randint(ks[4], (n_edges,), 0, n_relations,
                                   dtype=jnp.int32)
    edge_index = jnp.stack([head, tail], axis=0)

    params = []
    for h in range(n_hops):
        k1, k2, k3, k4 = jax.random.split(ks[5 + h], 4)
        a1 = (6.0 / (channel + channel)) ** 0.5
        a2 = (6.0 / (3 * channel)) ** 0.5
        params.append((
            jax.random.uniform(k1, (channel, channel), jnp.float32, -a1, a1),
            jax.random.uniform(k2, (channel,), jnp.float32, -0.1, 0.1),
            jax.random.uniform(k3, (channel, 2 * channel), jnp.float32, -a2, a2),
            jax.random.uniform(k4, (channel,), jnp.float32, -0.1, 0.1),
        ))

    # --- Aggregator (the Pallas kernel) -------------------------------------
    agg = aggregator_forward(entity_emb, edge_index, edge_type, weight)
    agg = jax.block_until_ready(agg)
    assert agg.shape == (n_entities, channel) and agg.dtype == jnp.float32

    ref_exact = _aggregator_ref_bf16(entity_emb, edge_index, edge_type, weight)
    assert jnp.allclose(agg, ref_exact, atol=1e-4, rtol=1e-4), \
        "aggregator mismatch vs bf16-consistent reference"
    ref_f32 = _aggregator_ref_f32(entity_emb, edge_index, edge_type, weight)
    assert jnp.allclose(agg, ref_f32, atol=5e-2, rtol=5e-2), \
        "aggregator mismatch vs f32 reference"

    # Exercise the multi-entity-block ("parallel") path with another edge tile.
    agg2 = aggregator_forward(entity_emb, edge_index, edge_type, weight,
                              e_tile=128, ent_block=64)
    agg2 = jax.block_until_ready(agg2)
    assert jnp.allclose(agg2, ref_exact, atol=1e-4, rtol=1e-4), \
        "aggregator (blocked) mismatch vs bf16-consistent reference"

    # --- Full GraphConv forward (eval mode), Pallas aggregator per hop ------
    res, rel = graph_conv_forward(entity_emb, edge_index, edge_type, weight,
                                  params)
    res = jax.block_until_ready(res)
    assert res.shape == (n_entities, channel)
    res_ref, _ = _graph_conv_ref(entity_emb, edge_index, edge_type, weight,
                                 params, _aggregator_ref_bf16)
    assert jnp.allclose(res, res_ref, atol=1e-3, rtol=1e-3), \
        "GraphConv mismatch vs bf16-consistent reference"
    res_f32, _ = _graph_conv_ref(entity_emb, edge_index, edge_type, weight,
                                 params, _aggregator_ref_f32)
    assert jnp.allclose(res, res_f32, atol=1e-1, rtol=1e-1), \
        "GraphConv mismatch vs f32 reference"
    assert jnp.array_equal(rel, weight)

    print("KERNEL_OK")
</pallas_src>

<mosaic_0001>
module attributes {stable_mosaic.version = 11 : i64} {
  func.func @_scatter_mean_kernel(%arg0: i32, %arg1: i32, %arg2: memref<1x1x256xi32, #tpu.memory_space<vmem>>, %arg3: memref<1x1x256xf32, #tpu.memory_space<vmem>>, %arg4: memref<256x128xbf16, #tpu.memory_space<vmem>>, %arg5: memref<128x128xf32, #tpu.memory_space<vmem>>) attributes {dimension_semantics = [#tpu.dimension_semantics<parallel>, #tpu.dimension_semantics<arbitrary>], iteration_bounds = array<i64: 1, 2>, scalar_prefetch = 0 : i64, scratch_operands = 0 : i64, tpu.core_type = #tpu.core_type<tc>, window_params = [{transform_indices = @transform_0, window_bounds = array<i64: 1, 1, 256>}, {transform_indices = @transform_1, window_bounds = array<i64: 1, 1, 256>}, {transform_indices = @transform_2, window_bounds = array<i64: 256, 128>}, {transform_indices = @transform_3, window_bounds = array<i64: 128, 128>}]} {
    %c0_i32 = arith.constant 0 : i32
    %0 = arith.cmpi eq, %arg1, %c0_i32 : i32
    %1 = arith.extui %0 : i1 to i32
    %c0_i32_0 = arith.constant 0 : i32
    %2 = arith.cmpi ne, %1, %c0_i32_0 : i32
    scf.if %2 {
      %cst_13 = arith.constant 0.000000e+00 : f32
      %23 = vector.broadcast %cst_13 : f32 to vector<128x128xf32>
      %c0_14 = arith.constant 0 : index
      %c0_15 = arith.constant 0 : index
      %24 = vector.load %arg5[%c0_14, %c0_15] : memref<128x128xf32, #tpu.memory_space<vmem>>, vector<128x128xf32>
      tpu.vector_store %arg5[%c0_14, %c0_15], %23 {strides = array<i32>} : memref<128x128xf32, #tpu.memory_space<vmem>>, vector<128x128xf32>,
    } else {
    }
    %c0 = arith.constant 0 : index
    %c0_1 = arith.constant 0 : index
    %c0_2 = arith.constant 0 : index
    %3 = vector.load %arg2[%c0, %c0_1, %c0_2] : memref<1x1x256xi32, #tpu.memory_space<vmem>>, vector<1x1x256xi32>
    %4 = vector.shape_cast %3 : vector<1x1x256xi32> to vector<1x256xi32>
    %c0_3 = arith.constant 0 : index
    %c0_4 = arith.constant 0 : index
    %c0_5 = arith.constant 0 : index
    %5 = vector.load %arg3[%c0_3, %c0_4, %c0_5] : memref<1x1x256xf32, #tpu.memory_space<vmem>>, vector<1x1x256xf32>
    %6 = vector.shape_cast %5 : vector<1x1x256xf32> to vector<1x256xf32>
    %c128_i32 = arith.constant 128 : i32
    %7 = arith.muli %arg0, %c128_i32 : i32
    %8 = tpu.iota {dimensions = array<i32: 0>} : vector<128x256xi32>
    %9 = vector.broadcast %7 : i32 to vector<128x256xi32>
    %10 = arith.addi %8, %9 : vector<128x256xi32>
    %11 = vector.broadcast %4 : vector<1x256xi32> to vector<128x256xi32>
    %12 = arith.cmpi eq, %10, %11 : vector<128x256xi32>
    %cst = arith.constant 0.000000e+00 : f32
    %13 = vector.shape_cast %6 : vector<1x256xf32> to vector<1x256xf32>
    %14 = vector.broadcast %13 : vector<1x256xf32> to vector<128x256xf32>
    %15 = vector.broadcast %cst : f32 to vector<128x256xf32>
    %16 = arith.select %12, %14, %15 : vector<128x256xi1>, vector<128x256xf32>
    %17 = arith.truncf %16 : vector<128x256xf32> to vector<128x256xbf16>
    %c0_6 = arith.constant 0 : index
    %c0_7 = arith.constant 0 : index
    %18 = vector.load %arg5[%c0_6, %c0_7] : memref<128x128xf32, #tpu.memory_space<vmem>>, vector<128x128xf32>
    %c0_8 = arith.constant 0 : index
    %c0_9 = arith.constant 0 : index
    %19 = vector.load %arg4[%c0_8, %c0_9] : memref<256x128xbf16, #tpu.memory_space<vmem>>, vector<256x128xbf16>
    %cst_10 = arith.constant dense<0.000000e+00> : vector<128x128xf32>
    %20 = tpu.matmul %17, %19, %cst_10 {dimension_numbers = #tpu.dot_dimension_numbers<[1], [0], [0], [1], [0, 0, 1, 1], [], []>} : vector<128x256xbf16>, vector<256x128xbf16>, vector<128x128xf32> -> vector<128x128xf32>
    %21 = arith.addf %18, %20 : vector<128x128xf32>
    %c0_11 = arith.constant 0 : index
    %c0_12 = arith.constant 0 : index
    %22 = vector.load %arg5[%c0_11, %c0_12] : memref<128x128xf32, #tpu.memory_space<vmem>>, vector<128x128xf32>
    tpu.vector_store %arg5[%c0_11, %c0_12], %21 {strides = array<i32>} : memref<128x128xf32, #tpu.memory_space<vmem>>, vector<128x128xf32>,
    return
  }
  func.func @transform_0(%arg0: i32, %arg1: i32) -> (i32, i32, i32) {
    %c0_i32 = arith.constant 0 : i32
    %c0_i32_0 = arith.constant 0 : i32
    %c0_i32_1 = arith.constant 0 : i32
    return %arg1, %c0_i32, %c0_i32_0 : i32, i32, i32
  }
  func.func @transform_1(%arg0: i32, %arg1: i32) -> (i32, i32, i32) {
    %c0_i32 = arith.constant 0 : i32
    %c0_i32_0 = arith.constant 0 : i32
    %c0_i32_1 = arith.constant 0 : i32
    return %arg1, %c0_i32, %c0_i32_0 : i32, i32, i32
  }
  func.func @transform_2(%arg0: i32, %arg1: i32) -> (i32, i32) {
    %c0_i32 = arith.constant 0 : i32
    %c0_i32_0 = arith.constant 0 : i32
    return %arg1, %c0_i32 : i32, i32
  }
  func.func @transform_3(%arg0: i32, %arg1: i32) -> (i32, i32) {
    %c0_i32 = arith.constant 0 : i32
    %c0_i32_0 = arith.constant 0 : i32
    return %arg0, %c0_i32 : i32, i32
  }
}

</mosaic_0001>

<bundles_post_ra>
// kernel: aggregator_forward.1
= control target key start
LH: loop header
LB: loop body
LE: loop exit
PB: predicated region body
PF: predicated region fallthrough
CT: control target
= control target key end

     0   :  { %8 = vsyncpa [#allocation3], 0  ;;  %s1601_s0 = inlined_call_operand.hbm [shape: s32[2,1,256], index: 0, kind: input, shape index: {}]   ;;  %s1602_s1 = inlined_call_operand.hbm [shape: f32[2,1,256], index: 1, kind: input, shape index: {}]   ;;  %s1603_s2 = inlined_call_operand.hbm [shape: bf16[512,128], index: 2, kind: input, shape index: {}]   ;;  %s1604_s3 = inlined_call_operand.hbm [shape: f32[128,128], index: 3, kind: output, shape index: {}]  }
   0x1   :  { %10 = vsyncpa [#allocation3 + $0x1], 0 }
   0x2   :  { %11 = vsyncpa [#allocation6], 0 }
   0x3   :  { %13 = vsyncpa [#allocation6 + $0x1], 0 }
   0x4   :  { %14 = vsyncpa [#allocation4], 0  ;;  %s1281_s12 = smov 0   ;;  %s1283_s13 = smov 0  }
   0x5   :  { %s1285_s14 = smov 0   ;;  %s1287_s15 = smov 0  }
   0x6   :  { %s1289_s16 = smov 0   ;;  %s1291_s17 = smov 0  }
   0x7 LB: > { %s1310_s18 = sadd.s32 4294967295, %s1250_s17   ;;  %s29_s19 = sadd.s32 1, %s1246_s16  ;;  %s1250_s17 = sphi %s1291_s17, %s20_s17   ;;  %s1246_s16 = sphi %s1289_s16, %s1616_s16   ;;  %s1242_s15 = sphi %s1287_s15, %s1615_s15   ;;  %s1238_s14 = sphi %s1285_s14, %s1614_s14   ;;  %s1234_s13 = sphi %s1283_s13, %s1613_s13   ;;  %s1230_s12 = sphi %s1281_s12, %s1612_s12  }
   0x8   : > { %p30_p0 = scmp.ge.s32.totalorder %s29_s19, 2  ;;  %s39_s20 = sadd.s32 1, %s1238_s14 }
   0x9   : > { %p46_p1 = scmp.ne.s32.totalorder %s1238_s14, %s1234_s13  ;;  %p47_p2 = scmp.eq.s32.totalorder %s1250_s17, 0 }
   0xa   : > { %s1618_s19 = smov (%p30_p0, %s29_s19), 0  ;;  %p52_p4 = scmp.ne.s32.totalorder %s1234_s13, %s1230_s12 }
   0xb   : > { %p48_p3 = por %p47_p2, %p46_p1  ;;  %s36_s21 = ssub.s32 %s1246_s16, %s1618_s19 }
   0xc   : > { %p53_p5 = scmp.eq.s32.totalorder %s1310_s18, 0  ;;  %p37_p6 = scmp.eq.s32.totalorder %s36_s21, 0 }
   0xd   : > { %p1003_p8 = scmp.lt.s32.totalorder %s1250_s17, 2  ;;  %s1332_s24 = sand.u32 1, %s1238_s14  }
   0xe   : > { %p1323_p7 = por %p53_p5, %p52_p4  ;;  %s900_s25 = sshll.u32 %s1246_s16, 5 }
   0xf   : > { %s1329_s23 = scalar_select %p37_p6, %s1238_s14, %s39_s20  }
  0x10   : > { %s1606_s22 = scalar_select %p1323_p7, 1, 0 }
  0x11   : > { %s818_s26 = sshll.u32 %s1332_s24, 1  ;;  %p1336_p9 = pnand %p1003_p8, %p48_p3 }
  0x12   : > { %s173_s28 = sand.u32 1, %s1250_s17   ;;  %s1346_s4 = scalar_lea.hbm %s1602_s1, %s900_s25 }
  0x13   : > { %s177_s5 = scalar_lea.vmem [#allocation5], %s818_s26  ;;  %s824_s7 = sshll.u32 %s1332_s24, 7 }
  0x14   : > { %s185_s6 = sshll.u32 %s177_s5, 4  ;;  %s1353_s8 = scalar_lea.sflag [#allocation6], %s173_s28  ;;  %s1350_s6 = int_to_ptr.vmem [resolvable:$true] %s185_s6 }
  0x15   : > { %s1076_s9 = scalar_lea.hbm %s1346_s4, 32  ;;  %p1359_p11 = pneg %p1336_p9 }
  0x16   : > { %p1077_p10 = scmp.ne.s32.totalorder %s1346_s4, %s1076_s9  ;;  %s1081_s20 = scalar_lea.hbm %s1602_s1, 64 }
  0x17   : > { %p1082_p0 = scmp.lt.u32.totalorder %s1346_s4, %s1602_s1  ;;  %p1083_p1 = scmp.lt.u32.totalorder %s1081_s20, %s1076_s9 }
  0x18   : > { %p1079_p12 = pnand %p1359_p11, %p1077_p10  ;;  %p1085_p3 = scmp.lt.u32.totalorder %s1076_s9, %s1346_s4 }
  0x19   : > { %p1084_p2 = por %p1083_p1, %p1082_p0 }
  0x1a   : > { %p1080_p13 = pneg %p1079_p12 }
  0x1b   : > { %p1086_p4 = por %p1085_p3, %p1084_p2 }
  0x1d   : > { %p1087_p5 = pnand %p1086_p4, %p1080_p13 }
  0x1f   : > { %1090 = shalt.err (!%p1087_p5)
}
  0x20   : > { %s1091_s28 = scalar_lea.vmem %s1350_s6, 32  ;;  %s1252_s30 = smov [#allocation5]  }
  0x21   : > { %p1092_p6 = scmp.ne.s32.totalorder %s1350_s6, %s1091_s28  ;;  %s1096_s5 = sshll.u32 %s1252_s30, 4  ;;  %s1097_s5 = int_to_ptr.vmem [resolvable:$false] %s1096_s5 }
  0x22   : > { %s1098_s11 = scalar_lea.vmem %s1097_s5, 64  ;;  %p1099_p12 = scmp.lt.s32.totalorder %s1350_s6, %s1097_s5 }
  0x23   : > { %p1094_p8 = pnand %p1092_p6, %p1359_p11  ;;  %p1100_p7 = scmp.lt.s32.totalorder %s1098_s11, %s1091_s28 }
  0x25   : > { %p1095_p10 = pneg %p1094_p8  ;;  %p1101_p0 = por %p1100_p7, %p1099_p12 }
  0x27   : > { %p1102_p1 = pnand %p1101_p0, %p1095_p10 }
  0x29   : > { %1105 = shalt.err (!%p1102_p1)
}
  0x2a   : > { %999 = dma.hbm_to_vmem [thread:$0]  (!%p1336_p9), %s1346_s4, 32, %s1350_s6, %s1353_s8  }
  0x2b   : > { %p827_p13 = scmp.ge.s32.totalorder %s1250_s17, 1  ;;  %s196_s9 = scalar_lea.vmem [#allocation7], %s824_s7 }
  0x2c   : > { %s203_s12 = sshll.u32 %s196_s9, 4  ;;  %p211_p7 = scmp.lt.s32.totalorder %s1250_s17, 3  ;;  %s1387_s12 = int_to_ptr.vmem [resolvable:$true] %s203_s12 }
  0x2d   : > { %s1398_s28 = scalar_lea.hbm %s1601_s0, %s900_s25  ;;  %s158_s4 = scalar_lea.vmem [#allocation2], %s818_s26 }
  0x2e   : > { %p1389_p2 = pnand %p827_p13, %p211_p7  ;;  %s166_s6 = sshll.u32 %s158_s4, 4  ;;  %s1402_s6 = int_to_ptr.vmem [resolvable:$true] %s166_s6 }
  0x2f   : > { %s902_s7 = sshll.u32 %s1246_s16, 11  ;;  %s155_s30 = scalar_lea.sflag [#allocation3], %s1332_s24 }
  0x30   : > { %s1609_s20 = scalar_select %p1389_p2, 1, 0 }
  0x31   : > { %s1106_s5 = scalar_lea.hbm %s1398_s28, 32  ;;  %s1111_s25 = scalar_lea.hbm %s1601_s0, 64 }
  0x32   : > { %p1107_p3 = scmp.ne.s32.totalorder %s1398_s28, %s1106_s5  ;;  %p1112_p6 = scmp.lt.u32.totalorder %s1398_s28, %s1601_s0 }
  0x33   : > { %p1113_p8 = scmp.lt.u32.totalorder %s1111_s25, %s1106_s5  ;;  %p1115_p12 = scmp.lt.u32.totalorder %s1106_s5, %s1398_s28 }
  0x34   : > { %p1109_p4 = pnand %p1107_p3, %p1359_p11 }
  0x35   : > { %p1114_p10 = por %p1113_p8, %p1112_p6 }
  0x36   : > { %p1110_p5 = pneg %p1109_p4 }
  0x37   : > { %p1116_p0 = por %p1115_p12, %p1114_p10 }
  0x39   : > { %p1117_p1 = pnand %p1116_p0, %p1110_p5 }
  0x3b   : > { %1120 = shalt.err (!%p1117_p1)
}
  0x3c   : > { %s1121_s24 = scalar_lea.vmem %s1402_s6, 32  ;;  %s1253_s26 = smov [#allocation2]  }
  0x3d   : > { %p1122_p13 = scmp.ne.s32.totalorder %s1402_s6, %s1121_s24  ;;  %s1126_s4 = sshll.u32 %s1253_s26, 4  ;;  %s1127_s4 = int_to_ptr.vmem [resolvable:$false] %s1126_s4 }
  0x3e   : > { %s1128_s11 = scalar_lea.vmem %s1127_s4, 64  ;;  %p1129_p4 = scmp.lt.s32.totalorder %s1402_s6, %s1127_s4 }
  0x3f   : > { %p1124_p7 = pnand %p1122_p13, %p1359_p11  ;;  %p1130_p2 = scmp.lt.s32.totalorder %s1128_s11, %s1121_s24 }
  0x41   : > { %p1125_p3 = pneg %p1124_p7  ;;  %p1131_p6 = por %p1130_p2, %p1129_p4 }
  0x43   : > { %p1132_p8 = pnand %p1131_p6, %p1125_p3 }
  0x45   : > { %1135 = shalt.err (!%p1132_p8)
}
  0x46   : > { %996 = dma.hbm_to_vmem [thread:$0]  (!%p1336_p9), %s1398_s28, 32, %s1402_s6, %s155_s30  }
  0x47   : > { %s1432_s25 = scalar_lea.hbm %s1603_s2, %s902_s7  ;;  %s1141_s26 = scalar_lea.hbm %s1603_s2, 4096 }
  0x48   : > { %s1136_s21 = scalar_lea.hbm %s1432_s25, 2048  ;;  %p1142_p12 = scmp.lt.u32.totalorder %s1432_s25, %s1603_s2 }
  0x49   : > { %p1137_p2 = scmp.ne.s32.totalorder %s1432_s25, %s1136_s21  ;;  %p1143_p0 = scmp.lt.u32.totalorder %s1141_s26, %s1136_s21 }
  0x4a   : > { %p1145_p13 = scmp.lt.u32.totalorder %s1136_s21, %s1432_s25 }
  0x4b   : > { %p1139_p5 = pnand %p1137_p2, %p1359_p11  ;;  %p1144_p1 = por %p1143_p0, %p1142_p12 }
  0x4d   : > { %p1140_p10 = pneg %p1139_p5  ;;  %p1146_p7 = por %p1145_p13, %p1144_p1 }
  0x4f   : > { %p1147_p3 = pnand %p1146_p7, %p1140_p10 }
  0x51   : > { %1150 = shalt.err (!%p1147_p3)
}
  0x52   : > { %s1151_s7 = scalar_lea.vmem %s1387_s12, 2048  ;;  %s1254_s30 = smov [#allocation7]  }
  0x53   : > { %p1152_p4 = scmp.ne.s32.totalorder %s1387_s12, %s1151_s7  ;;  %s1156_s4 = sshll.u32 %s1254_s30, 4  ;;  %s1157_s4 = int_to_ptr.vmem [resolvable:$false] %s1156_s4 }
  0x54   : > { %s1158_s11 = scalar_lea.vmem %s1157_s4, 4096  ;;  %p1159_p2 = scmp.lt.s32.totalorder %s1387_s12, %s1157_s4 }
  0x55   : > { %p1154_p6 = pnand %p1152_p4, %p1359_p11  ;;  %p1160_p5 = scmp.lt.s32.totalorder %s1158_s11, %s1151_s7 }
  0x57   : > { %p1155_p8 = pneg %p1154_p6  ;;  %p1161_p12 = por %p1160_p5, %p1159_p2 }
  0x59   : > { %p1162_p0 = pnand %p1161_p12, %p1155_p8 }
  0x5b   : > { %1165 = shalt.err (!%p1162_p0)
}
  0x5c   : > { %s1255_s5 = smov 64   ;;  %s1256_s9 = smov 4  }
  0x5d   : > { %1002 = dma.hbm_to_vmem [thread:$0]  (!%p1336_p9), %s1432_s25, 2048, %s1387_s12, %s1353_s8, %s1255_s5, %s1255_s5, %s1256_s9  }
  0x5e   : > { %p1610_p11 = scmp.ne.s32.totalorder %s1609_s20, 0 }
  0x5f   : > { %s217_s10 = sand.u32 (!%p1610_p11), 1, %s1234_s13   ;;  %p1611_p10 = scmp.ne.s32.totalorder (!%p1610_p11), %s1606_s22, 0 }
  0x60   : > { %215 = sbr.rel (%p1610_p11) target bundleno = 409 (0x199), region = 32  ;;  %s828_s21 = sshll.u32 (!%p1610_p11), %s217_s10, 1 }
  0x61   : > { %s218_s29 = scalar_lea.sflag (!%p1610_p11), [#allocation3], %s217_s10  ;;  %s1459_s24 = scalar_lea.vmem (!%p1610_p11), [#allocation2], %s828_s21 }
  0x67   : > { %1217 = dma.done.wait (%p1611_p10), %s218_s29, 32  }
  0x68   : > { %1219 = vsyncadd (%p1611_p10), %s218_s29, 4294967264  ;;  %s226_s26 = sand.u32 1, %s1310_s18   ;;  %s1466_s8 = scalar_lea.vmem [#allocation5], %s828_s21 }
  0x69   : > { %s227_s27 = scalar_lea.sflag [#allocation6], %s226_s26 }
  0x6a   : > { %1221 = dma.done.wait (%p1611_p10), %s227_s27, 2080  }
  0x6b   : > { %1223 = vsyncadd (%p1611_p10), %s227_s27, 4294965216  ;;  %s830_s12 = sshll.u32 %s217_s10, 7  ;;  %p831_p9 = scmp.ne.s32.totalorder %s1242_s15, 0 }
  0x6c   : > { %s1472_s20 = scalar_lea.vmem [#allocation7], %s830_s12  ;;  %v1257_v0 = vmov (!%p831_p9), 0.0  }
  0x6d   : > { %273 = sbr.rel (%p831_p9) target bundleno = 117 (0x75), region = 48  ;;  %274 = vst [vmem:[#allocation8] sm:$0xff] (!%p831_p9), %v1257_v0  ;;  %275 = vst [vmem:[#allocation8 + $0x8] sm:$0xff] (!%p831_p9), %v1257_v0 }
  0x6e   : > { %276 = vst [vmem:[#allocation8 + $0x10] sm:$0xff] (!%p831_p9), %v1257_v0  ;;  %277 = vst [vmem:[#allocation8 + $0x18] sm:$0xff] (!%p831_p9), %v1257_v0 }
  0x6f   : > { %278 = vst [vmem:[#allocation8 + $0x20] sm:$0xff] (!%p831_p9), %v1257_v0  ;;  %279 = vst [vmem:[#allocation8 + $0x28] sm:$0xff] (!%p831_p9), %v1257_v0 }
  0x70   : > { %280 = vst [vmem:[#allocation8 + $0x30] sm:$0xff] (!%p831_p9), %v1257_v0  ;;  %281 = vst [vmem:[#allocation8 + $0x38] sm:$0xff] (!%p831_p9), %v1257_v0 }
  0x71   : > { %282 = vst [vmem:[#allocation8 + $0x40] sm:$0xff] (!%p831_p9), %v1257_v0  ;;  %283 = vst [vmem:[#allocation8 + $0x48] sm:$0xff] (!%p831_p9), %v1257_v0 }
  0x72   : > { %284 = vst [vmem:[#allocation8 + $0x50] sm:$0xff] (!%p831_p9), %v1257_v0  ;;  %285 = vst [vmem:[#allocation8 + $0x58] sm:$0xff] (!%p831_p9), %v1257_v0 }
  0x73   : > { %286 = vst [vmem:[#allocation8 + $0x60] sm:$0xff] (!%p831_p9), %v1257_v0  ;;  %287 = vst [vmem:[#allocation8 + $0x68] sm:$0xff] (!%p831_p9), %v1257_v0 }
  0x74   : > { %288 = vst [vmem:[#allocation8 + $0x70] sm:$0xff] %v1257_v0  ;;  %289 = vst [vmem:[#allocation8 + $0x78] sm:$0xff] %v1257_v0 }
  0x75 PF: > { %v1060_v1 = vld [vmem:[%s1472_s20 + $0x40] sm:$0xff]   ;;  %v1062_v3 = vld [vmem:[%s1472_s20 + $0x48] sm:$0xff]   ;;  %v1064_v5 = vld [vmem:[%s1472_s20 + $0x50] sm:$0xff]   ;;  %v293_v6 = vlaneseq  ;;  %s1258_s15 = smov [#allocation8]   ;;  %p1004_p1 = scmp.eq.s32.totalorder %s1310_s18, 1 }
  0x76   : > { %v1061_v2 = vld [vmem:[%s1472_s20] sm:$0xff]   ;;  %903 = vmatprep.subr.bf16.mxu0 %v1060_v1  ;;  %967 = vmatprep.subr.bf16.mxu1 %v1060_v1  ;;  %v1063_v4 = vld [vmem:[%s1472_s20 + $0x8] sm:$0xff]   ;;  %v1065_v7 = vld [vmem:[%s1472_s20 + $0x10] sm:$0xff]   ;;  %s708_s22 = sshll.u32 %s1258_s15, 4  ;;  %s709_s22 = int_to_ptr.vmem [resolvable:$true] %s708_s22 }
  0x77   : > { %904 = vmatpush3.bf16.msra.mxu0 %v1061_v2  ;;  %975 = vmatpush3.bf16.msra.mxu1 %v1061_v2  ;;  %v1066_v8 = vld [vmem:[%s1472_s20 + $0x58] sm:$0xff]   ;;  %v1482_v9 = vshrl.u32 %v293_v6, 7  ;;  %v1068_v11 = vld [vmem:[%s1472_s20 + $0x60] sm:$0xff]   ;;  %v1070_v16 = vld [vmem:[%s1472_s20 + $0x68] sm:$0xff]   ;;  %s1166_s25 = scalar_lea.vmem %s709_s22, 2048  ;;  %p1173_p4 = scmp.lt.s32.totalorder %s709_s22, %s709_s22 }
  0x78   : > { %905 = vmatprep.subr.bf16.mxu0 %v1062_v3  ;;  %968 = vmatprep.subr.bf16.mxu1 %v1062_v3  ;;  %v1067_v10 = vld [vmem:[%s1472_s20 + $0x18] sm:$0xff]   ;;  %v1069_v14 = vld [vmem:[%s1472_s20 + $0x20] sm:$0xff]   ;;  %v1071_v23 = vld [vmem:[%s1472_s20 + $0x28] sm:$0xff]   ;;  %p1167_p13 = scmp.ne.s32.totalorder %s709_s22, %s1166_s25  ;;  %p1174_p6 = scmp.lt.s32.totalorder %s1166_s25, %s1166_s25 }
  0x79   : > { %v333_v12 = vsub.s32 1, %v1482_v9  ;;  %v295_v13 = vadd.s32 8, %v1482_v9  ;;  %v302_v15 = vadd.s32 64, %v1482_v9  ;;  %v290_v17 = vld [vmem:[%s1459_s24] sm:$0x3]  ;;  %v303_v19 = vadd.s32 72, %v1482_v9 }
  0x7a   : > { %v291_v18 = vld [vmem:[%s1466_s8] sm:$0x3]  ;;  %v329_v22 = vsub.s32 0, %v1482_v9  ;;  %v1072_v25 = vld [vmem:[%s1472_s20 + $0x70] sm:$0xff]   ;;  %v296_v29 = vadd.s32 16, %v1482_v9  ;;  %v297_v30 = vadd.s32 24, %v1482_v9  ;;  %p1168_p7 = pnand %p1167_p13, %p1004_p1  ;;  %p1175_p8 = por %p1174_p6, %p1173_p4 }
  0x7b   : > { %906 = vmatpush3.bf16.msra.mxu0 %v1063_v4  ;;  %976 = vmatpush3.bf16.msra.mxu1 %v1063_v4  ;;  %v1494_v20 = vrot.slane %v290_v17, %v333_v12  ;;  %v375_v21 = vrot.slane %v291_v18, %v333_v12  ;;  %v1073_v27 = vld [vmem:[%s1472_s20 + $0x30] sm:$0xff]   ;;  %v1074_v28 = vld [vmem:[%s1472_s20 + $0x78] sm:$0xff]   ;;  %v304_v31 = vadd.s32 80, %v1482_v9  ;;  %v305_v32 = vadd.s32 88, %v1482_v9  ;;  %v426_v46 = vld [vmem:[#allocation8] sm:$0xff] }
  0x7c   : > { %907 = vmatprep.subr.bf16.mxu0 %v1064_v5  ;;  %969 = vmatprep.subr.bf16.mxu1 %v1064_v5  ;;  %v1508_v26 = vrot.slane %v290_v17, %v329_v22  ;;  %v371_v33 = vrot.slane %v291_v18, %v329_v22  ;;  %v1075_v34 = vld [vmem:[%s1472_s20 + $0x38] sm:$0xff]   ;;  %v298_v36 = vadd.s32 32, %v1482_v9  ;;  %v299_v37 = vadd.s32 40, %v1482_v9  ;;  %v434_v48 = vld [vmem:[#allocation8 + $0x40] sm:$0xff]  ;;  %v427_v54 = vld [vmem:[#allocation8 + $0x8] sm:$0xff]  ;;  %p1169_p3 = pneg %p1168_p7 }
  0x7d   : > { %vm336_vm0 = vcmp.eq.s32.totalorder %v1482_v9, %v1494_v20  ;;  %vm338_vm1 = vcmp.eq.s32.totalorder %v295_v13, %v1494_v20  ;;  %v1501_v24 = vpack.c.bf16 %v375_v21, %v375_v21  ;;  %vm352_vm3 = vcmp.eq.s32.totalorder %v302_v15, %v1494_v20  ;;  %v435_v56 = vld [vmem:[#allocation8 + $0x48] sm:$0xff]  ;;  %v428_v2 = vld [vmem:[#allocation8 + $0x10] sm:$0xff]  ;;  %v437_v12 = vld [vmem:[#allocation8 + $0x58] sm:$0xff] }
  0x7e   : > { %vm848_vm2 = vmpackc.low %vm338_vm1, %vm336_vm0  ;;  %vm354_vm4 = vcmp.eq.s32.totalorder %v303_v19, %v1494_v20  ;;  %vm335_vm6 = vcmp.eq.s32.totalorder %v1482_v9, %v1508_v26  ;;  %vm337_vm7 = vcmp.eq.s32.totalorder %v295_v13, %v1508_v26  ;;  %vm351_vm8 = vcmp.eq.s32.totalorder %v302_v15, %v1508_v26  ;;  %v436_v4 = vld [vmem:[#allocation8 + $0x50] sm:$0xff]  ;;  %v430_v22 = vld [vmem:[#allocation8 + $0x20] sm:$0xff]  ;;  %p1176_p2 = pnand %p1175_p8, %p1169_p3 }
  0x7f   : > { %908 = vmatpush3.bf16.msra.mxu0 %v1065_v7  ;;  %977 = vmatpush3.bf16.msra.mxu1 %v1065_v7  ;;  %vm872_vm5 = vmpackc.low %vm354_vm4, %vm352_vm3  ;;  %vm353_vm9 = vcmp.eq.s32.totalorder %v303_v19, %v1508_v26  ;;  %vm340_vm10 = vcmp.eq.s32.totalorder %v296_v29, %v1494_v20  ;;  %vm342_vm11 = vcmp.eq.s32.totalorder %v297_v30, %v1494_v20  ;;  %v306_v38 = vadd.s32 96, %v1482_v9 }
  0x80   : > { %909 = vmatprep.subr.bf16.mxu0 %v1066_v8  ;;  %970 = vmatprep.subr.bf16.mxu1 %v1066_v8  ;;  %vm851_vm12 = vmpackc.low %vm337_vm7, %vm335_vm6  ;;  %vm356_vm13 = vcmp.eq.s32.totalorder %v304_v31, %v1494_v20  ;;  %vm358_vm14 = vcmp.eq.s32.totalorder %v305_v32, %v1494_v20  ;;  %v852_v35 = vpack.c.bf16 %v371_v33, %v371_v33  ;;  %v307_v39 = vadd.s32 104, %v1482_v9 }
  0x81   : > { %850 = vmatprep.mubr.msk.bf16.mxu0 %vm848_vm2, %v1501_v24  ;;  %874 = vmatprep.mubr.msk.bf16.mxu1 %vm872_vm5, %v1501_v24  ;;  %vm875_vm15 = vmpackc.low %vm353_vm9, %vm351_vm8  ;;  %vm339_vm2 = vcmp.eq.s32.totalorder %v296_v29, %v1508_v26  ;;  %vm341_vm3 = vcmp.eq.s32.totalorder %v297_v30, %v1508_v26  ;;  %vm355_vm4 = vcmp.eq.s32.totalorder %v304_v31, %v1508_v26  ;;  %v300_v40 = vadd.s32 48, %v1482_v9  ;;  %v431_v30 = vld [vmem:[#allocation8 + $0x28] sm:$0xff] }
  0x82   : > { %vm854_vm0 = vmpackc.low %vm342_vm11, %vm340_vm10  ;;  %vm357_vm5 = vcmp.eq.s32.totalorder %v305_v32, %v1508_v26  ;;  %vm344_vm6 = vcmp.eq.s32.totalorder %v298_v36, %v1494_v20  ;;  %vm346_vm7 = vcmp.eq.s32.totalorder %v299_v37, %v1494_v20  ;;  %vm360_vm9 = vcmp.eq.s32.totalorder %v306_v38, %v1494_v20  ;;  %v439_v32 = vld [vmem:[#allocation8 + $0x68] sm:$0xff] }
  0x83   : > { %910 = vmatpush3.bf16.msra.mxu0 %v1067_v10  ;;  %978 = vmatpush3.bf16.msra.mxu1 %v1067_v10  ;;  %vm878_vm1 = vmpackc.low %vm358_vm14, %vm356_vm13  ;;  %vm362_vm10 = vcmp.eq.s32.totalorder %v307_v39, %v1494_v20  ;;  %v301_v41 = vadd.s32 56, %v1482_v9  ;;  %v308_v42 = vadd.s32 112, %v1482_v9  ;;  %v309_v43 = vadd.s32 120, %v1482_v9  ;;  %v429_v10 = vld [vmem:[#allocation8 + $0x18] sm:$0xff] }
  0x84   : > { %911 = vmatprep.subr.bf16.mxu0 %v1068_v11  ;;  %971 = vmatprep.subr.bf16.mxu1 %v1068_v11  ;;  %vm857_vm8 = vmpackc.low %vm341_vm3, %vm339_vm2  ;;  %vm343_vm14 = vcmp.eq.s32.totalorder %v298_v36, %v1508_v26  ;;  %vm348_vm2 = vcmp.eq.s32.totalorder %v300_v40, %v1494_v20 }
  0x85   : > { %vm881_vm11 = vmpackc.low %vm357_vm5, %vm355_vm4  ;;  %vm350_vm3 = vcmp.eq.s32.totalorder %v301_v41, %v1494_v20  ;;  %vm364_vm5 = vcmp.eq.s32.totalorder %v308_v42, %v1494_v20 }
  0x86   : > { %vm884_vm13 = vmpackc.low %vm362_vm10, %vm360_vm9  ;;  %vm347_vm10 = vcmp.eq.s32.totalorder %v300_v40, %v1508_v26 }
  0x87   : > { %912 = vmatpush3.bf16.msra.mxu0 %v1069_v14  ;;  %979 = vmatpush3.bf16.msra.mxu1 %v1069_v14 }
  0x88   : > { %913 = vmatprep.subr.bf16.mxu0 %v1070_v16  ;;  %972 = vmatprep.subr.bf16.mxu1 %v1070_v16 }
  0x8b   : > { %914 = vmatpush3.bf16.msra.mxu0 %v1071_v23  ;;  %980 = vmatpush3.bf16.msra.mxu1 %v1071_v23 }
  0x8c   : > { %915 = vmatprep.subr.bf16.mxu0 %v1072_v25  ;;  %973 = vmatprep.subr.bf16.mxu1 %v1072_v25 }
  0x8f   : > { %916 = vmatpush3.bf16.msra.mxu0 %v1073_v27  ;;  %981 = vmatpush3.bf16.msra.mxu1 %v1073_v27 }
  0x90   : > { %917 = vmatprep.subr.bf16.mxu0 %v1074_v28  ;;  %974 = vmatprep.subr.bf16.mxu1 %v1074_v28 }
  0x93   : > { %918 = vmatpush3.bf16.msra.mxu0 %v1075_v34  ;;  %982 = vmatpush3.bf16.msra.mxu1 %v1075_v34 }
  0x96   : > { %853 = vmatmul.mubr.msk.bf16.vlgmr.msra.gmra.mrb[0].mxu0 %vm851_vm12, %v852_v35  ;;  %877 = vmatmul.mubr.msk.bf16.vlgmr.msra.gmra.mrb[0].mxu1 %vm875_vm15, %v852_v35  ;;  %vm860_vm12 = vmpackc.low %vm346_vm7, %vm344_vm6  ;;  %vm345_vm15 = vcmp.eq.s32.totalorder %v299_v37, %v1508_v26  ;;  %vm366_vm6 = vcmp.eq.s32.totalorder %v309_v43, %v1494_v20 }
  0x97   : > { %856 = vmatprep.mubr.msk.bf16.mxu0 %vm854_vm0, %v1501_v24  ;;  %880 = vmatprep.mubr.msk.bf16.mxu1 %vm878_vm1, %v1501_v24  ;;  %vm359_vm0 = vcmp.eq.s32.totalorder %v306_v38, %v1508_v26  ;;  %vm361_vm1 = vcmp.eq.s32.totalorder %v307_v39, %v1508_v26  ;;  %vm863_vm4 = vmpackc.low %vm345_vm15, %vm343_vm14 }
  0x98   : > { %vm887_vm7 = vmpackc.low %vm361_vm1, %vm359_vm0 }
  0x99   : > { %vm890_vm9 = vmpackc.low %vm366_vm6, %vm364_vm5 }
  0x9e   : > { %859 = vmatmul.mubr.msk.bf16.gmra.mrb[4].mxu0 %vm857_vm8, %v852_v35  ;;  %883 = vmatmul.mubr.msk.bf16.gmra.mrb[4].mxu1 %vm881_vm11, %v852_v35  ;;  %vm866_vm8 = vmpackc.low %vm350_vm3, %vm348_vm2  ;;  %vm349_vm11 = vcmp.eq.s32.totalorder %v301_v41, %v1508_v26 }
  0x9f   : > { %862 = vmatprep.mubr.msk.bf16.mxu0 %vm860_vm12, %v1501_v24  ;;  %886 = vmatprep.mubr.msk.bf16.mxu1 %vm884_vm13, %v1501_v24  ;;  %vm363_vm12 = vcmp.eq.s32.totalorder %v308_v42, %v1508_v26  ;;  %vm365_vm13 = vcmp.eq.s32.totalorder %v309_v43, %v1508_v26  ;;  %vm869_vm14 = vmpackc.low %vm349_vm11, %vm347_vm10  ;;  %v432_v42 = vld [vmem:[#allocation8 + $0x30] sm:$0xff] }
  0xa0   : > { %vm893_vm15 = vmpackc.low %vm365_vm13, %vm363_vm12 }
  0xa6   : > { %865 = vmatmul.mubr.msk.bf16.gmra.mrb[8].mxu0 %vm863_vm4, %v852_v35  ;;  %889 = vmatmul.mubr.msk.bf16.gmra.mrb[8].mxu1 %vm887_vm7, %v852_v35 }
  0xa7   : > { %868 = vmatprep.mubr.msk.bf16.mxu0 %vm866_vm8, %v1501_v24  ;;  %892 = vmatprep.mubr.msk.bf16.mxu1 %vm890_vm9, %v1501_v24  ;;  %v438_v24 = vld [vmem:[#allocation8 + $0x60] sm:$0xff] }
  0xae   : > { %871 = vmatmul.mubr.msk.bf16.gmra.mrb[12].mxu0 %vm869_vm14, %v852_v35  ;;  %895 = vmatmul.mubr.msk.bf16.gmra.mrb[12].mxu1 %vm893_vm15, %v852_v35 }
 0x169   : > { %v919_v44 = vpop.f32.mrb[0].mxu0  ;;  %v943_v45 = vpop.f32.mrb[0].mxu1 }
 0x16a   : > { %v920_v47 = vpop.f32.mrb[1].mxu0  ;;  %v944_v49 = vpop.f32.mrb[1].mxu1 }
 0x16b   : > { %v921_v50 = vadd.f32 %v920_v47, %v919_v44  ;;  %v945_v51 = vadd.f32 %v944_v49, %v943_v45  ;;  %v922_v52 = vpop.f32.mrb[2].mxu0  ;;  %v946_v53 = vpop.f32.mrb[2].mxu1  ;;  %v440_v44 = vld [vmem:[#allocation8 + $0x70] sm:$0xff] }
 0x16c   : > { %v923_v55 = vpop.f32.mrb[3].mxu0  ;;  %v947_v57 = vpop.f32.mrb[3].mxu1 }
 0x16d   : > { %v667_v58 = vadd.f32 %v921_v50, %v426_v46  ;;  %v675_v59 = vadd.f32 %v945_v51, %v434_v48  ;;  %v924_v60 = vadd.f32 %v923_v55, %v922_v52  ;;  %v948_v61 = vadd.f32 %v947_v57, %v946_v53  ;;  %v433_v50 = vld [vmem:[#allocation8 + $0x38] sm:$0xff] }
 0x16e   : > { %v441_v52 = vld [vmem:[#allocation8 + $0x78] sm:$0xff] }
 0x16f   : > { %683 = vst [vmem:[#allocation8] sm:$0xff] %v667_v58  ;;  %691 = vst [vmem:[#allocation8 + $0x40] sm:$0xff] %v675_v59  ;;  %v668_v62 = vadd.f32 %v924_v60, %v427_v54  ;;  %v676_v63 = vadd.f32 %v948_v61, %v435_v56 }
 0x171   : > { %684 = vst [vmem:[#allocation8 + $0x8] sm:$0xff] %v668_v62  ;;  %692 = vst [vmem:[#allocation8 + $0x48] sm:$0xff] %v676_v63  ;;  %v925_v0 = vpop.f32.mrb[4].mxu0  ;;  %v949_v1 = vpop.f32.mrb[4].mxu1 }
 0x172   : > { %v926_v3 = vpop.f32.mrb[5].mxu0  ;;  %v950_v5 = vpop.f32.mrb[5].mxu1 }
 0x173   : > { %v927_v6 = vadd.f32 %v926_v3, %v925_v0  ;;  %v951_v7 = vadd.f32 %v950_v5, %v949_v1  ;;  %v928_v8 = vpop.f32.mrb[6].mxu0  ;;  %v952_v9 = vpop.f32.mrb[6].mxu1 }
 0x174   : > { %v929_v11 = vpop.f32.mrb[7].mxu0  ;;  %v953_v13 = vpop.f32.mrb[7].mxu1 }
 0x175   : > { %v669_v14 = vadd.f32 %v927_v6, %v428_v2  ;;  %v677_v15 = vadd.f32 %v951_v7, %v436_v4  ;;  %v930_v16 = vadd.f32 %v929_v11, %v928_v8  ;;  %v954_v17 = vadd.f32 %v953_v13, %v952_v9 }
 0x177   : > { %685 = vst [vmem:[#allocation8 + $0x10] sm:$0xff] %v669_v14  ;;  %693 = vst [vmem:[#allocation8 + $0x50] sm:$0xff] %v677_v15  ;;  %v670_v18 = vadd.f32 %v930_v16, %v429_v10  ;;  %v678_v19 = vadd.f32 %v954_v17, %v437_v12 }
 0x179   : > { %686 = vst [vmem:[#allocation8 + $0x18] sm:$0xff] %v670_v18  ;;  %694 = vst [vmem:[#allocation8 + $0x58] sm:$0xff] %v678_v19  ;;  %v931_v20 = vpop.f32.mrb[8].mxu0  ;;  %v955_v21 = vpop.f32.mrb[8].mxu1 }
 0x17a   : > { %v932_v23 = vpop.f32.mrb[9].mxu0  ;;  %v956_v25 = vpop.f32.mrb[9].mxu1 }
 0x17b   : > { %v933_v26 = vadd.f32 %v932_v23, %v931_v20  ;;  %v957_v27 = vadd.f32 %v956_v25, %v955_v21  ;;  %v934_v28 = vpop.f32.mrb[10].mxu0  ;;  %v958_v29 = vpop.f32.mrb[10].mxu1 }
 0x17c   : > { %v935_v31 = vpop.f32.mrb[11].mxu0  ;;  %v959_v33 = vpop.f32.mrb[11].mxu1 }
 0x17d   : > { %v671_v34 = vadd.f32 %v933_v26, %v430_v22  ;;  %v679_v35 = vadd.f32 %v957_v27, %v438_v24  ;;  %v936_v36 = vadd.f32 %v935_v31, %v934_v28  ;;  %v960_v37 = vadd.f32 %v959_v33, %v958_v29 }
 0x17f   : > { %687 = vst [vmem:[#allocation8 + $0x20] sm:$0xff] %v671_v34  ;;  %695 = vst [vmem:[#allocation8 + $0x60] sm:$0xff] %v679_v35  ;;  %v672_v38 = vadd.f32 %v936_v36, %v431_v30  ;;  %v680_v39 = vadd.f32 %v960_v37, %v439_v32 }
 0x181   : > { %688 = vst [vmem:[#allocation8 + $0x28] sm:$0xff] %v672_v38  ;;  %696 = vst [vmem:[#allocation8 + $0x68] sm:$0xff] %v680_v39  ;;  %v937_v40 = vpop.f32.mrb[12].mxu0  ;;  %v961_v41 = vpop.f32.mrb[12].mxu1 }
 0x182   : > { %v938_v43 = vpop.f32.mrb[13].mxu0  ;;  %v962_v45 = vpop.f32.mrb[13].mxu1 }
 0x183   : > { %v939_v46 = vadd.f32 %v938_v43, %v937_v40  ;;  %v963_v47 = vadd.f32 %v962_v45, %v961_v41  ;;  %v940_v48 = vpop.f32.mrb[14].mxu0  ;;  %v964_v49 = vpop.f32.mrb[14].mxu1 }
 0x184   : > { %v941_v51 = vpop.f32.mrb[15].mxu0  ;;  %v965_v53 = vpop.f32.mrb[15].mxu1 }
 0x185   : > { %v673_v54 = vadd.f32 %v939_v46, %v432_v42  ;;  %v681_v55 = vadd.f32 %v963_v47, %v440_v44  ;;  %v942_v56 = vadd.f32 %v941_v51, %v940_v48  ;;  %v966_v57 = vadd.f32 %v965_v53, %v964_v49 }
 0x187   : > { %689 = vst [vmem:[#allocation8 + $0x30] sm:$0xff] %v673_v54  ;;  %697 = vst [vmem:[#allocation8 + $0x70] sm:$0xff] %v681_v55  ;;  %v674_v58 = vadd.f32 %v942_v56, %v433_v50  ;;  %v682_v59 = vadd.f32 %v966_v57, %v441_v52 }
 0x189   : > { %690 = vst [vmem:[#allocation8 + $0x38] sm:$0xff] %v674_v58  ;;  %698 = vst [vmem:[#allocation8 + $0x78] sm:$0xff] %v682_v59 }
 0x18a   : > { %1179 = shalt.err (!%p1176_p2)
}
 0x18b   : > { %s1180_s7 = scalar_lea.hbm %s1604_s3, 2048 }
 0x18c   : > { %p1181_p5 = scmp.ne.s32.totalorder %s1604_s3, %s1180_s7  ;;  %p1186_p11 = scmp.lt.u32.totalorder %s1180_s7, %s1604_s3 }
 0x18e   : > { %p1182_p12 = pnand %p1181_p5, %p1004_p1 }
 0x190   : > { %p1183_p0 = pneg %p1182_p12 }
 0x192   : > { %p1188_p10 = pnand %p1186_p11, %p1183_p0 }
 0x194   : > { %1191 = shalt.err (!%p1188_p10)
}
 0x195   : > { %s1259_s9 = smov 128   ;;  %s1260_s10 = smov 8  }
 0x196   : > { %990 = dma.vmem_to_hbm [thread:$0]  (%p1004_p1), %s709_s22, 2048, %s1604_s3, [#allocation4], %s1259_s9, %s1259_s9, %s1260_s10  }
 0x197   : > { %1225 = dma.done.wait (%p1004_p1), [#allocation4], 2048  }
 0x198   : > { %1227 = vsyncadd (%p1004_p1), [#allocation4], 4294965248 }
 0x199 PF: > { %s20_s17 = sadd.s32 1, %s1250_s17   ;;  %s1612_s12 = smov %s1234_s13 }
 0x19a   : > { %p17_p9 = scmp.ge.s32.totalorder %s20_s17, 4   ;;  %s1613_s13 = smov %s1238_s14 }
 0x19b   : > { %s1614_s14 = smov %s1329_s23  ;;  %s1615_s15 = smov %s1246_s16 }
 0x19c   : > { %s1616_s16 = smov %s1618_s19  ;;  %19 = sbr.rel (!%p17_p9) target bundleno = 7 (0x7), region = 98 }
 0x1a3   :  { %724 = vsyncpa [#allocation3], 1 }
 0x1a4   :  { %726 = vsyncpa [#allocation3 + $0x1], 1 }
 0x1a5   :  { %727 = vsyncpa [#allocation6], 1 }
 0x1a6   :  { %729 = vsyncpa [#allocation6 + $0x1], 1 }
 0x1a7   :  { %730 = vsyncpa [#allocation4], 1 }
 0x1a8   :  { %732 = vsyncpa [#allocation4 + $0x1], 1 }

</bundles_post_ra>
